<compile_context>
chip_gen: v6e
topology: v6e:2x2x1
jax: 0.10.0
libtpu: 0.0.40
codegen_flags: <defaults>
</compile_context>

<pallas_src>
import jax
import jax.numpy as jnp
from jax.experimental import pallas as pl
from jax.experimental.pallas import tpu as pltpu


_LANES = 128                    # vreg lane width: lane-dense last dim => unmasked vst
_TILE_BYTES = 2 * 1024 * 1024   # per-buffer tile budget (safe for v5e scoped VMEM)


def _round_up(n: int, m: int) -> int:
    return ((n + m - 1) // m) * m


def _sublane(dtype) -> int:
    # Packed min-tile second-minor dim: 8 (f32), 16 (bf16/f16), 32 (int8/fp8).
    itemsize = int(jnp.dtype(dtype).itemsize)
    return max(8, 32 // max(itemsize, 1))


# ------------------------------- kernels -------------------------------------
def _copy_tile_kernel(x_ref, o_ref):
    # Hot path: whole-tile VMEM copy (no slicing/reshaping inside the body).
    o_ref[...] = x_ref[...]


def _dma_copy_kernel(x_hbm_ref, o_hbm_ref, sem):
    # Single blockless HBM->HBM DMA: zero per-step overhead, zero VMEM staging.
    cp = pltpu.make_async_copy(x_hbm_ref, o_hbm_ref, sem)
    cp.start()
    cp.wait()


# ------------------------------- wrappers -------------------------------------
def _dma_identity(x: jax.Array) -> jax.Array:
    """Blockless HBM->HBM copy: hits the copy roofline on all generations."""
    n_bytes = x.size * int(jnp.dtype(x.dtype).itemsize)
    return pl.pallas_call(
        _dma_copy_kernel,
        out_shape=jax.ShapeDtypeStruct(x.shape, x.dtype),
        in_specs=[pl.BlockSpec(memory_space=pl.ANY)],
        out_specs=pl.BlockSpec(memory_space=pl.ANY),
        scratch_shapes=[pltpu.SemaphoreType.DMA],
        compiler_params=pltpu.CompilerParams(has_side_effects=True),
        cost_estimate=pl.CostEstimate(
            flops=0, transcendentals=0, bytes_accessed=2 * n_bytes),
    )(x)


def _tiled_identity(x: jax.Array) -> jax.Array:
    """Lane-dense tiled VMEM-staged copy (no wrapper-side pad/slice passes)."""
    orig_shape = x.shape
    n = x.size
    itemsize = int(jnp.dtype(x.dtype).itemsize)
    sub = _sublane(x.dtype)

    # Form a lane-dense 2-D view with ZERO padding.
    if len(orig_shape) >= 1 and orig_shape[-1] % _LANES == 0:
        cols = orig_shape[-1]          # typical vision hidden sizes: multiple of 128
    elif n % _LANES == 0:
        cols = _LANES
    else:
        # Ragged element count: a single HBM->HBM DMA beats pad+copy+slice
        # (1 read + 1 write instead of up to 3x HBM traffic).
        return _dma_identity(x)
    rows = n // cols
    x2d = x.reshape(rows, cols)

    if rows <= sub:
        # Full-extent block on the sublane axis (exempt from divisibility rule).
        tr = rows
    else:
        # Byte-budget tile rows, rounded to the dtype's packed sublane count.
        tr = (_TILE_BYTES // (cols * itemsize)) // sub * sub
        # Keep >= 2 grid steps where possible so v7x shards across its 2 TCs.
        tr = min(tr, _round_up(pl.cdiv(rows, 2), sub), _round_up(rows, sub))
        tr = max(sub, tr)

    grid = (pl.cdiv(rows, tr),)        # Pallas masks/pads the ragged final block.
    out2d = pl.pallas_call(
        _copy_tile_kernel,
        out_shape=jax.ShapeDtypeStruct((rows, cols), x.dtype),
        grid=grid,
        in_specs=[pl.BlockSpec((tr, cols), lambda i: (i, 0))],
        out_specs=pl.BlockSpec((tr, cols), lambda i: (i, 0)),
        compiler_params=pltpu.CompilerParams(
            dimension_semantics=("parallel",)),
        cost_estimate=pl.CostEstimate(
            flops=0, transcendentals=0, bytes_accessed=2 * n * itemsize),
    )(x2d)
    return out2d.reshape(orig_shape)


def identity_map(x: jax.Array, *args, materialize: bool = False,
                 method: str = "dma", **kwargs) -> jax.Array:
    """Pallas equivalent of IdentityMap.forward(x, *args, **kwargs) -> x.

    Default: return x directly (zero HBM traffic — the dominant optimization).
    materialize=True produces a fresh buffer equal to x via either a blockless
    HBM->HBM DMA (method="dma", default) or a lane-dense tiled copy ("tiled").
    """
    if not materialize:
        return x
    if x.size == 0:
        return x
    if method == "tiled":
        return _tiled_identity(x)
    return _dma_identity(x)


def identity_map_config():
    return {"mm_projector_type": "identity"}


if __name__ == "__main__":
    key = jax.random.PRNGKey(0)
    k1, k2 = jax.random.split(key)

    # Small projector-style input: batch=2, seq=8, hidden=32.
    x = jax.random.normal(k1, (2, 8, 32), dtype=jnp.float32)

    # Fast path: true identity, no kernel launch.
    y_fast = identity_map(x)
    assert y_fast is x

    # Materialized path #1: blockless HBM->HBM DMA (default).
    y_dma = identity_map(x, materialize=True)
    jax.block_until_ready(y_dma)
    assert y_dma.shape == x.shape and y_dma.dtype == x.dtype
    assert bool(jnp.array_equal(y_dma, x))

    # Materialized path #2: tiled lane-dense copy, small input
    # (full-extent sublane block: rows=4 <= 8).
    y_tiled_small = identity_map(x, materialize=True, method="tiled")
    jax.block_until_ready(y_tiled_small)
    assert bool(jnp.array_equal(y_tiled_small, x))

    # Tiled path on a larger lane-dense input: exercises a multi-step parallel
    # grid with a ragged final block handled by Pallas (rows=120, tr=64, grid=2).
    x_big = jax.random.normal(k2, (3, 40, 256), dtype=jnp.float32)
    y_tiled_big = identity_map(x_big, materialize=True, method="tiled")
    jax.block_until_ready(y_tiled_big)
    assert y_tiled_big.shape == x_big.shape and y_tiled_big.dtype == x_big.dtype
    assert bool(jnp.array_equal(y_tiled_big, x_big))

    print("KERNEL_OK")
</pallas_src>

<mosaic_0001>
module attributes {stable_mosaic.version = 11 : i64} {
  func.func @_dma_copy_kernel(%arg0: memref<2x8x32xf32, #tpu.memory_space<any>>, %arg1: memref<2x8x32xf32, #tpu.memory_space<any>>, %arg2: memref<!tpu.dma_semaphore, #tpu.memory_space<semaphore_mem>>) attributes {dimension_semantics = [], scalar_prefetch = 0 : i64, scratch_operands = 1 : i64, tpu.core_type = #tpu.core_type<tc>} {
    tpu.enqueue_dma source(%arg0 : memref<2x8x32xf32, #tpu.memory_space<any>>) target(%arg1 : memref<2x8x32xf32, #tpu.memory_space<any>>) target_semaphore(%arg2 : memref<!tpu.dma_semaphore, #tpu.memory_space<semaphore_mem>>)
    tpu.wait_dma2 semaphore(%arg2 : memref<!tpu.dma_semaphore, #tpu.memory_space<semaphore_mem>>) src(%arg0 : memref<2x8x32xf32, #tpu.memory_space<any>>) dst(%arg1 : memref<2x8x32xf32, #tpu.memory_space<any>>)
    return
  }
}

</mosaic_0001>

<bundles_post_ra>
// kernel: tpu_custom_call.1
= control target key start
LH: loop header
LB: loop body
LE: loop exit
PB: predicated region body
PF: predicated region fallthrough
CT: control target
= control target key end

     0   :  { %s29_s6 = smov [#allocation2]   ;;  %s30_s7 = smov 131072   ;;  %s48_s0 = inlined_call_operand.hbm [shape: f32[2,8,32], index: 0, kind: input, shape index: {}]   ;;  %s49_s1 = inlined_call_operand.hbm [shape: f32[2,8,32], index: 1, kind: output, shape index: {}]  }
   0x1   :  { %s31_s8 = smov 0  }
   0x2   :  { %12 = dma.general %s48_s0, 256, %s49_s1, %s29_s6, %s30_s7, [#allocation4], %s31_s8, 0  }
   0x3   :  { %27 = dma.done.wait [#allocation2], 256 }
   0x4   :  { %28 = vsyncadd [#allocation2], 4294967040 }
   0x5   :  { %17 = vsyncmov [#allocation2] }
   0x8   :  { %s18_s13 = vpop.sfrf %17 }
   0x9   :  { %p23_p0 = scmp.ne.s32.totalorder %s18_s13, 0 }
   0xb   :  { %22 = shalt.err (%p23_p0)  }

</bundles_post_ra>
